<compile_context>
chip_gen: v5e
topology: v5e:2x2
jax: 0.10.0
libtpu: 0.0.40
codegen_flags: <defaults>
</compile_context>

<pallas_src>
import functools
import math

import jax
import jax.numpy as jnp
from jax.experimental import pallas as pl
from jax.experimental.pallas import tpu as pltpu

# Set to jnp.bfloat16 for ~2x MXU throughput / half the A,B DMA traffic
# (accumulation stays f32 either way).  Kept at float32 so numerics match the
# PyTorch reference tightly.
GEMM_INPUT_DTYPE = jnp.float32


def _round_up(x, m):
    return (x + m - 1) // m * m


# ----------------------------------------------------------------------------
# Pallas kernels
# ----------------------------------------------------------------------------
def _gemm_bias_kernel(a_ref, b_ref, bias_ref, o_ref, acc_ref):
    """Tiled GEMM with K-reduction in VMEM scratch and bias fused in epilogue."""
    @pl.when(pl.program_id(2) == 0)
    def _():
        acc_ref[...] = jnp.zeros_like(acc_ref)

    acc_ref[...] += jnp.dot(a_ref[...], b_ref[...],
                            preferred_element_type=jnp.float32)

    @pl.when(pl.program_id(2) == pl.num_programs(2) - 1)
    def _():
        o_ref[...] = (acc_ref[...] + bias_ref[...]).astype(o_ref.dtype)


def _attention_kernel(q_ref, k_ref, v_ref, o_ref, *, scale, n_valid):
    """Fused scores + softmax + PV for one (batch, head) block of shape (1, NP, DP)."""
    q = q_ref[...]
    k = k_ref[...]
    v = v_ref[...]
    s = jnp.einsum("bqd,bkd->bqk", q, k,
                   preferred_element_type=jnp.float32) * scale
    if n_valid < s.shape[-1]:   # static: mask zero-padded key rows
        kv_idx = jax.lax.broadcasted_iota(jnp.int32, s.shape, 2)
        s = jnp.where(kv_idx < n_valid, s, -jnp.inf)
    m = jnp.max(s, axis=-1, keepdims=True)
    p = jnp.exp(s - m)
    l = jnp.sum(p, axis=-1, keepdims=True)
    ctx = jnp.einsum("bqk,bkd->bqd", p, v,
                     preferred_element_type=jnp.float32)
    o_ref[...] = (ctx / l).astype(o_ref.dtype)


# ----------------------------------------------------------------------------
# Pallas wrappers
# ----------------------------------------------------------------------------
def pallas_linear(x2d, w, b):
    """y = x2d @ w + b.   x2d: (M, K), w: (K, N), b: (N,), all f32."""
    M, K = x2d.shape
    Kw, Nout = w.shape
    assert K == Kw

    # Lane (N) dim: pad to 128; 256-wide tiles when they divide evenly.
    NP = _round_up(Nout, 128)
    tn = 256 if NP % 256 == 0 else 128
    # Contraction (K): pad only to the 128 requirement, tile up to 512.
    KP = _round_up(K, 128)
    tk = next(t for t in (512, 384, 256, 128) if KP % t == 0)
    # Sublane (M): tile to at most 256 rows per block (never full M).
    if M > 256:
        tm = 256
        MP = _round_up(M, tm)
    else:
        tm = _round_up(M, 8)
        MP = tm

    a_p = jnp.pad(x2d, ((0, MP - M), (0, KP - K))).astype(GEMM_INPUT_DTYPE)
    w_p = jnp.pad(w, ((0, KP - K), (0, NP - Nout))).astype(GEMM_INPUT_DTYPE)
    b_p = jnp.pad(b, (0, NP - Nout)).reshape(1, NP).astype(jnp.float32)

    grid = (MP // tm, NP // tn, KP // tk)
    cost = pl.CostEstimate(
        flops=2 * MP * NP * KP,
        transcendentals=0,
        bytes_accessed=4 * (MP * KP + KP * NP + MP * NP),
    )
    out = pl.pallas_call(
        _gemm_bias_kernel,
        out_shape=jax.ShapeDtypeStruct((MP, NP), jnp.float32),
        grid_spec=pltpu.PrefetchScalarGridSpec(
            num_scalar_prefetch=0,
            grid=grid,
            in_specs=[
                pl.BlockSpec((tm, tk), lambda i, j, k: (i, k)),
                pl.BlockSpec((tk, tn), lambda i, j, k: (k, j)),
                pl.BlockSpec((1, tn), lambda i, j, k: (0, j)),
            ],
            out_specs=pl.BlockSpec((tm, tn), lambda i, j, k: (i, j)),
            scratch_shapes=[pltpu.VMEM((tm, tn), jnp.float32)],
        ),
        compiler_params=pltpu.CompilerParams(
            dimension_semantics=("parallel", "parallel", "arbitrary"),
            vmem_limit_bytes=32 * 1024 * 1024,
        ),
        cost_estimate=cost,
    )(a_p, w_p, b_p)
    return out[:M, :Nout]


def pallas_attention(q, k, v, *, scale):
    """q/k/v: (B*H, N, D) f32 -> softmax(q k^T * scale) @ v, shape (B*H, N, D)."""
    BH, N, D = q.shape
    NP = _round_up(N, 8)
    DP = _round_up(D, 128)

    def pad(t):
        return jnp.pad(t, ((0, 0), (0, NP - N), (0, DP - D)))

    qp, kp, vp = pad(q), pad(k), pad(v)
    spec = pl.BlockSpec((1, NP, DP), lambda i: (i, 0, 0))
    kernel = functools.partial(_attention_kernel, scale=scale, n_valid=N)
    cost = pl.CostEstimate(
        flops=4 * BH * NP * NP * DP,
        transcendentals=BH * NP * NP,
        bytes_accessed=4 * BH * NP * DP * 4,
    )
    out = pl.pallas_call(
        kernel,
        out_shape=jax.ShapeDtypeStruct((BH, NP, DP), jnp.float32),
        grid_spec=pltpu.PrefetchScalarGridSpec(
            num_scalar_prefetch=0,
            grid=(BH,),
            in_specs=[spec, spec, spec],
            out_specs=spec,
        ),
        compiler_params=pltpu.CompilerParams(
            dimension_semantics=("parallel",),
            vmem_limit_bytes=32 * 1024 * 1024,
        ),
        cost_estimate=cost,
    )(qp, kp, vp)
    return out[:, :N, :D]


# ----------------------------------------------------------------------------
# MultiHeadAttention forward
# ----------------------------------------------------------------------------
def init_params(key, embed_dim, num_heads):
    assert embed_dim % num_heads == 0
    ks = jax.random.split(key, 8)
    s = 1.0 / math.sqrt(embed_dim)

    def lin(kw, kb, n_out):
        w = jax.random.uniform(kw, (embed_dim, n_out), jnp.float32, -s, s)
        b = jax.random.uniform(kb, (n_out,), jnp.float32, -s, s)
        return w, b

    wq, bq = lin(ks[0], ks[1], embed_dim)
    wk, bk = lin(ks[2], ks[3], embed_dim)
    wv, bv = lin(ks[4], ks[5], embed_dim)
    wo, bo = lin(ks[6], ks[7], embed_dim)
    return {
        "w_qkv": jnp.concatenate([wq, wk, wv], axis=1),   # (C, 3C), y = x @ W + b
        "b_qkv": jnp.concatenate([bq, bk, bv], axis=0),   # (3C,)
        "w_out": wo,                                      # (C, C)
        "b_out": bo,                                      # (C,)
    }


def mha_forward(params, x, mask=None, *, num_heads):
    # TODO(synk): optional boolean attention `mask` not implemented (mask=None path only).
    assert mask is None
    B, N, C = x.shape
    D = C // num_heads
    x2d = x.reshape(B * N, C)

    qkv = pallas_linear(x2d, params["w_qkv"], params["b_qkv"])    # (B*N, 3C)
    q, k, v = jnp.split(qkv, 3, axis=-1)

    def to_heads(t):
        return (t.reshape(B, N, num_heads, D)
                 .transpose(0, 2, 1, 3)
                 .reshape(B * num_heads, N, D))

    qh, kh, vh = to_heads(q), to_heads(k), to_heads(v)
    ctx = pallas_attention(qh, kh, vh, scale=1.0 / math.sqrt(D))  # (B*H, N, D)
    ctx = (ctx.reshape(B, num_heads, N, D)
              .transpose(0, 2, 1, 3)
              .reshape(B * N, C))
    out = pallas_linear(ctx, params["w_out"], params["b_out"])
    return out.reshape(B, N, C)


def mha_reference(params, x, *, num_heads):
    """Pure-JAX reference mirroring the PyTorch module (for a sanity check)."""
    B, N, C = x.shape
    D = C // num_heads
    qkv = x.reshape(B * N, C) @ params["w_qkv"] + params["b_qkv"]
    q, k, v = jnp.split(qkv, 3, axis=-1)

    def heads(t):
        return t.reshape(B, N, num_heads, D).transpose(0, 2, 1, 3)

    q, k, v = heads(q), heads(k), heads(v)
    s = jnp.einsum("bhnd,bhmd->bhnm", q, k) / math.sqrt(D)
    w = jax.nn.softmax(s, axis=-1)
    ctx = jnp.einsum("bhnm,bhmd->bhnd", w, v)
    ctx = ctx.transpose(0, 2, 1, 3).reshape(B * N, C)
    return (ctx @ params["w_out"] + params["b_out"]).reshape(B, N, C)


if __name__ == "__main__":
    B, N, C, H = 2, 8, 32, 4           # batch=2, seq=8, embed=32, heads=4
    key = jax.random.PRNGKey(0)
    pkey, xkey = jax.random.split(key)
    params = init_params(pkey, C, H)
    x = jax.random.normal(xkey, (B, N, C), dtype=jnp.float32)

    fwd = jax.jit(functools.partial(mha_forward, num_heads=H))
    y = jax.block_until_ready(fwd(params, x))

    assert y.shape == (B, N, C), y.shape
    assert bool(jnp.all(jnp.isfinite(y)))

    y_ref = mha_reference(params, x, num_heads=H)
    assert bool(jnp.allclose(y, y_ref, rtol=2e-2, atol=2e-2)), (
        float(jnp.max(jnp.abs(y - y_ref))))
    print("KERNEL_OK")
</pallas_src>

<mosaic_0001>
module attributes {stable_mosaic.version = 11 : i64} {
  func.func @_gemm_bias_kernel(%arg0: i32, %arg1: i32, %arg2: i32, %arg3: memref<16x128xf32, #tpu.memory_space<vmem>>, %arg4: memref<128x128xf32, #tpu.memory_space<vmem>>, %arg5: memref<1x128xf32, #tpu.memory_space<vmem>>, %arg6: memref<16x128xf32, #tpu.memory_space<vmem>>, %arg7: memref<16x128xf32, #tpu.memory_space<vmem>>) attributes {dimension_semantics = [#tpu.dimension_semantics<parallel>, #tpu.dimension_semantics<parallel>, #tpu.dimension_semantics<arbitrary>], iteration_bounds = array<i64: 1, 1, 1>, scalar_prefetch = 0 : i64, scratch_operands = 1 : i64, tpu.core_type = #tpu.core_type<tc>, window_params = [{transform_indices = @transform_0, window_bounds = array<i64: 16, 128>}, {transform_indices = @transform_1, window_bounds = array<i64: 128, 128>}, {transform_indices = @transform_2, window_bounds = array<i64: 1, 128>}, {transform_indices = @transform_3, window_bounds = array<i64: 16, 128>}]} {
    %c0_i32 = arith.constant 0 : i32
    %0 = arith.cmpi eq, %arg2, %c0_i32 : i32
    %1 = arith.extui %0 : i1 to i32
    %c0_i32_0 = arith.constant 0 : i32
    %2 = arith.cmpi ne, %1, %c0_i32_0 : i32
    scf.if %2 {
      %cst_10 = arith.constant 0.000000e+00 : f32
      %12 = vector.broadcast %cst_10 : f32 to vector<16x128xf32>
      %c0_11 = arith.constant 0 : index
      %c0_12 = arith.constant 0 : index
      %13 = vector.load %arg7[%c0_11, %c0_12] : memref<16x128xf32, #tpu.memory_space<vmem>>, vector<16x128xf32>
      tpu.vector_store %arg7[%c0_11, %c0_12], %12 {strides = array<i32>} : memref<16x128xf32, #tpu.memory_space<vmem>>, vector<16x128xf32>,
    } else {
    }
    %c0 = arith.constant 0 : index
    %c0_1 = arith.constant 0 : index
    %3 = vector.load %arg7[%c0, %c0_1] : memref<16x128xf32, #tpu.memory_space<vmem>>, vector<16x128xf32>
    %c0_2 = arith.constant 0 : index
    %c0_3 = arith.constant 0 : index
    %4 = vector.load %arg3[%c0_2, %c0_3] : memref<16x128xf32, #tpu.memory_space<vmem>>, vector<16x128xf32>
    %c0_4 = arith.constant 0 : index
    %c0_5 = arith.constant 0 : index
    %5 = vector.load %arg4[%c0_4, %c0_5] : memref<128x128xf32, #tpu.memory_space<vmem>>, vector<128x128xf32>
    %cst = arith.constant dense<0.000000e+00> : vector<16x128xf32>
    %6 = tpu.matmul %4, %5, %cst {dimension_numbers = #tpu.dot_dimension_numbers<[1], [0], [0], [1], [0, 0, 1, 1], [], []>} : vector<16x128xf32>, vector<128x128xf32>, vector<16x128xf32> -> vector<16x128xf32>
    %7 = arith.addf %3, %6 : vector<16x128xf32>
    %c0_6 = arith.constant 0 : index
    %c0_7 = arith.constant 0 : index
    %8 = vector.load %arg7[%c0_6, %c0_7] : memref<16x128xf32, #tpu.memory_space<vmem>>, vector<16x128xf32>
    tpu.vector_store %arg7[%c0_6, %c0_7], %7 {strides = array<i32>} : memref<16x128xf32, #tpu.memory_space<vmem>>, vector<16x128xf32>,
    %c0_i32_8 = arith.constant 0 : i32
    %9 = arith.cmpi eq, %arg2, %c0_i32_8 : i32
    %10 = arith.extui %9 : i1 to i32
    %c0_i32_9 = arith.constant 0 : i32
    %11 = arith.cmpi ne, %10, %c0_i32_9 : i32
    scf.if %11 {
      %c0_10 = arith.constant 0 : index
      %c0_11 = arith.constant 0 : index
      %12 = vector.load %arg7[%c0_10, %c0_11] : memref<16x128xf32, #tpu.memory_space<vmem>>, vector<16x128xf32>
      %c0_12 = arith.constant 0 : index
      %c0_13 = arith.constant 0 : index
      %13 = vector.load %arg5[%c0_12, %c0_13] : memref<1x128xf32, #tpu.memory_space<vmem>>, vector<1x128xf32>
      %14 = vector.broadcast %13 : vector<1x128xf32> to vector<16x128xf32>
      %15 = arith.addf %12, %14 : vector<16x128xf32>
      %c0_14 = arith.constant 0 : index
      %c0_15 = arith.constant 0 : index
      %16 = vector.load %arg6[%c0_14, %c0_15] : memref<16x128xf32, #tpu.memory_space<vmem>>, vector<16x128xf32>
      tpu.vector_store %arg6[%c0_14, %c0_15], %15 {strides = array<i32>} : memref<16x128xf32, #tpu.memory_space<vmem>>, vector<16x128xf32>,
    } else {
    }
    return
  }
  func.func @transform_0(%arg0: i32, %arg1: i32, %arg2: i32) -> (i32, i32) {
    %c0_i32 = arith.constant 0 : i32
    return %arg0, %arg2 : i32, i32
  }
  func.func @transform_1(%arg0: i32, %arg1: i32, %arg2: i32) -> (i32, i32) {
    %c0_i32 = arith.constant 0 : i32
    return %arg2, %arg1 : i32, i32
  }
  func.func @transform_2(%arg0: i32, %arg1: i32, %arg2: i32) -> (i32, i32) {
    %c0_i32 = arith.constant 0 : i32
    %c0_i32_0 = arith.constant 0 : i32
    return %c0_i32, %arg1 : i32, i32
  }
  func.func @transform_3(%arg0: i32, %arg1: i32, %arg2: i32) -> (i32, i32) {
    %c0_i32 = arith.constant 0 : i32
    return %arg0, %arg1 : i32, i32
  }
}

module attributes {stable_mosaic.version = 11 : i64} {
  func.func @_attention_kernel(%arg0: i32, %arg1: memref<1x8x128xf32, #tpu.memory_space<vmem>>, %arg2: memref<1x8x128xf32, #tpu.memory_space<vmem>>, %arg3: memref<1x8x128xf32, #tpu.memory_space<vmem>>, %arg4: memref<1x8x128xf32, #tpu.memory_space<vmem>>) attributes {dimension_semantics = [#tpu.dimension_semantics<parallel>], iteration_bounds = array<i64: 8>, scalar_prefetch = 0 : i64, scratch_operands = 0 : i64, tpu.core_type = #tpu.core_type<tc>, window_params = [{transform_indices = @transform_0, window_bounds = array<i64: 1, 8, 128>}, {transform_indices = @transform_1, window_bounds = array<i64: 1, 8, 128>}, {transform_indices = @transform_2, window_bounds = array<i64: 1, 8, 128>}, {transform_indices = @transform_3, window_bounds = array<i64: 1, 8, 128>}]} {
    %c0 = arith.constant 0 : index
    %c0_0 = arith.constant 0 : index
    %c0_1 = arith.constant 0 : index
    %0 = vector.load %arg1[%c0, %c0_0, %c0_1] : memref<1x8x128xf32, #tpu.memory_space<vmem>>, vector<1x8x128xf32>
    %c0_2 = arith.constant 0 : index
    %c0_3 = arith.constant 0 : index
    %c0_4 = arith.constant 0 : index
    %1 = vector.load %arg2[%c0_2, %c0_3, %c0_4] : memref<1x8x128xf32, #tpu.memory_space<vmem>>, vector<1x8x128xf32>
    %c0_5 = arith.constant 0 : index
    %c0_6 = arith.constant 0 : index
    %c0_7 = arith.constant 0 : index
    %2 = vector.load %arg3[%c0_5, %c0_6, %c0_7] : memref<1x8x128xf32, #tpu.memory_space<vmem>>, vector<1x8x128xf32>
    "tpu.trace_start"() <{level = 10 : i32, message = "bqd,bkd->bqk"}> : () -> ()
    %cst = arith.constant dense<0.000000e+00> : vector<1x8x8xf32>
    %3 = tpu.matmul %0, %1, %cst {dimension_numbers = #tpu.dot_dimension_numbers<[2], [2], [1], [1], [0, 0, 0, 1, 1, 1], [0], [0]>} : vector<1x8x128xf32>, vector<1x8x128xf32>, vector<1x8x8xf32> -> vector<1x8x8xf32>
    "tpu.trace_stop"() : () -> ()
    %cst_8 = arith.constant 0.353553385 : f32
    %4 = vector.broadcast %cst_8 : f32 to vector<1x8x8xf32>
    %5 = arith.mulf %3, %4 : vector<1x8x8xf32>
    %cst_9 = arith.constant dense<0xFF800000> : vector<1x8xf32>
    %6 = vector.multi_reduction <maximumf>, %5, %cst_9 [2] : vector<1x8x8xf32> to vector<1x8xf32>
    %7 = vector.shape_cast %6 : vector<1x8xf32> to vector<1x8x1xf32>
    %8 = vector.broadcast %7 : vector<1x8x1xf32> to vector<1x8x8xf32>
    %9 = arith.subf %5, %8 : vector<1x8x8xf32>
    %10 = math.exp %9 : vector<1x8x8xf32>
    %cst_10 = arith.constant dense<0.000000e+00> : vector<1x8xf32>
    %11 = vector.multi_reduction <add>, %10, %cst_10 [2] : vector<1x8x8xf32> to vector<1x8xf32>
    %12 = vector.shape_cast %11 : vector<1x8xf32> to vector<1x8x1xf32>
    "tpu.trace_start"() <{level = 10 : i32, message = "bqk,bkd->bqd"}> : () -> ()
    %cst_11 = arith.constant dense<0.000000e+00> : vector<1x8x128xf32>
    %13 = tpu.matmul %10, %2, %cst_11 {dimension_numbers = #tpu.dot_dimension_numbers<[2], [1], [1], [2], [0, 0, 0, 1, 1, 2], [0], [0]>} : vector<1x8x8xf32>, vector<1x8x128xf32>, vector<1x8x128xf32> -> vector<1x8x128xf32>
    "tpu.trace_stop"() : () -> ()
    %14 = vector.broadcast %12 : vector<1x8x1xf32> to vector<1x8x128xf32>
    %15 = arith.divf %13, %14 : vector<1x8x128xf32>
    %c0_12 = arith.constant 0 : index
    %c0_13 = arith.constant 0 : index
    %c0_14 = arith.constant 0 : index
    %16 = vector.load %arg4[%c0_12, %c0_13, %c0_14] : memref<1x8x128xf32, #tpu.memory_space<vmem>>, vector<1x8x128xf32>
    tpu.vector_store %arg4[%c0_12, %c0_13, %c0_14], %15 {strides = array<i32>} : memref<1x8x128xf32, #tpu.memory_space<vmem>>, vector<1x8x128xf32>,
    return
  }
  func.func @transform_0(%arg0: i32) -> (i32, i32, i32) {
    %c0_i32 = arith.constant 0 : i32
    %c0_i32_0 = arith.constant 0 : i32
    %c0_i32_1 = arith.constant 0 : i32
    return %arg0, %c0_i32, %c0_i32_0 : i32, i32, i32
  }
  func.func @transform_1(%arg0: i32) -> (i32, i32, i32) {
    %c0_i32 = arith.constant 0 : i32
    %c0_i32_0 = arith.constant 0 : i32
    %c0_i32_1 = arith.constant 0 : i32
    return %arg0, %c0_i32, %c0_i32_0 : i32, i32, i32
  }
  func.func @transform_2(%arg0: i32) -> (i32, i32, i32) {
    %c0_i32 = arith.constant 0 : i32
    %c0_i32_0 = arith.constant 0 : i32
    %c0_i32_1 = arith.constant 0 : i32
    return %arg0, %c0_i32, %c0_i32_0 : i32, i32, i32
  }
  func.func @transform_3(%arg0: i32) -> (i32, i32, i32) {
    %c0_i32 = arith.constant 0 : i32
    %c0_i32_0 = arith.constant 0 : i32
    %c0_i32_1 = arith.constant 0 : i32
    return %arg0, %c0_i32, %c0_i32_0 : i32, i32, i32
  }
}

</mosaic_0001>

<bundles_post_ra>
// kernel: mha_forward.3
= control target key start
LH: loop header
LB: loop body
LE: loop exit
PB: predicated region body
PF: predicated region fallthrough
CT: control target
= control target key end

     0   :  { %s184_s1 = inlined_call_operand.vmem [shape: f32[128,128], index: 1, kind: input, shape index: {}]   ;;  %s185_s2 = inlined_call_operand.vmem [shape: f32[1,128], index: 2, kind: input, shape index: {}]   ;;  %s186_s0 = inlined_call_operand.vmem [shape: f32[16,128], index: 0, kind: input, shape index: {}]   ;;  %s187_s3 = inlined_call_operand.vmem [shape: f32[16,128], index: 3, kind: output, shape index: {}]  }
   0x1   :  { %v39_v0 = vld [vmem:[%s184_s1 + $0x78] sm:$0xff]  ;;  %v38_v1 = vld [vmem:[%s184_s1 + $0x70] sm:$0xff]  ;;  %v37_v2 = vld [vmem:[%s184_s1 + $0x68] sm:$0xff] }
   0x2   :  { %40 = vmatpush.msra.mxu0 %v39_v0  ;;  %84 = vmatpush.msra.mxu1 %v39_v0  ;;  %v36_v3 = vld [vmem:[%s184_s1 + $0x60] sm:$0xff]  ;;  %v35_v4 = vld [vmem:[%s184_s1 + $0x58] sm:$0xff]  ;;  %v34_v5 = vld [vmem:[%s184_s1 + $0x50] sm:$0xff] }
   0x3   :  { %v33_v6 = vld [vmem:[%s184_s1 + $0x48] sm:$0xff]  ;;  %v32_v7 = vld [vmem:[%s184_s1 + $0x40] sm:$0xff]  ;;  %v31_v8 = vld [vmem:[%s184_s1 + $0x38] sm:$0xff] }
   0x4   :  { %41 = vmatpush.msra.mxu0 %v38_v1  ;;  %85 = vmatpush.msra.mxu1 %v38_v1  ;;  %v30_v9 = vld [vmem:[%s184_s1 + $0x30] sm:$0xff]  ;;  %v29_v10 = vld [vmem:[%s184_s1 + $0x28] sm:$0xff]  ;;  %v28_v11 = vld [vmem:[%s184_s1 + $0x20] sm:$0xff] }
   0x5   :  { %v27_v12 = vld [vmem:[%s184_s1 + $0x18] sm:$0xff]  ;;  %v26_v13 = vld [vmem:[%s184_s1 + $0x10] sm:$0xff]  ;;  %v25_v14 = vld [vmem:[%s184_s1 + $0x8] sm:$0xff] }
   0x6   :  { %42 = vmatpush.msra.mxu0 %v37_v2  ;;  %86 = vmatpush.msra.mxu1 %v37_v2  ;;  %v24_v15 = vld [vmem:[%s184_s1] sm:$0xff]  ;;  %v23_v17 = vld [vmem:[%s186_s0 + $0x8] sm:$0xff] }
   0x7   :  { %v22_v16 = vld [vmem:[%s186_s0] sm:$0xff] }
   0x8   :  { %43 = vmatpush.msra.mxu0 %v36_v3  ;;  %87 = vmatpush.msra.mxu1 %v36_v3  ;;  %v100_v18 = vld [vmem:[%s185_s2] ss:$0 sm:$0xff] }
   0xa   :  { %44 = vmatpush.msra.mxu0 %v35_v4  ;;  %88 = vmatpush.msra.mxu1 %v35_v4 }
   0xc   :  { %45 = vmatpush.msra.mxu0 %v34_v5  ;;  %89 = vmatpush.msra.mxu1 %v34_v5 }
   0xe   :  { %46 = vmatpush.msra.mxu0 %v33_v6  ;;  %90 = vmatpush.msra.mxu1 %v33_v6 }
  0x10   :  { %47 = vmatpush.msra.mxu0 %v32_v7  ;;  %91 = vmatpush.msra.mxu1 %v32_v7 }
  0x12   :  { %48 = vmatpush.msra.mxu0 %v31_v8  ;;  %92 = vmatpush.msra.mxu1 %v31_v8 }
  0x14   :  { %49 = vmatpush.msra.mxu0 %v30_v9  ;;  %93 = vmatpush.msra.mxu1 %v30_v9 }
  0x16   :  { %50 = vmatpush.msra.mxu0 %v29_v10  ;;  %94 = vmatpush.msra.mxu1 %v29_v10 }
  0x18   :  { %51 = vmatpush.msra.mxu0 %v28_v11  ;;  %95 = vmatpush.msra.mxu1 %v28_v11 }
  0x1a   :  { %52 = vmatpush.msra.mxu0 %v27_v12  ;;  %96 = vmatpush.msra.mxu1 %v27_v12 }
  0x1c   :  { %53 = vmatpush.msra.mxu0 %v26_v13  ;;  %97 = vmatpush.msra.mxu1 %v26_v13 }
  0x1e   :  { %54 = vmatpush.msra.mxu0 %v25_v14  ;;  %98 = vmatpush.msra.mxu1 %v25_v14 }
  0x20   :  { %55 = vmatpush.msra.mxu0 %v24_v15  ;;  %99 = vmatpush.msra.mxu1 %v24_v15 }
  0x21   :  { %56 = vmatmul.f32.vlgmr.msra.gmra.mxu0 %v22_v16  ;;  %59 = vmatmul.f32.vlgmr.msra.gmra.mxu1 %v23_v17 }
  0x9e   :  { %v57_v19 = vpop.f32.mrf.mxu0  ;;  %v60_v20 = vpop.f32.mrf.mxu1 }
  0x9f   :  { %v76_v21 = vadd.f32 %v100_v18, %v57_v19  ;;  %v77_v22 = vadd.f32 %v100_v18, %v60_v20 }
  0xa1   :  { %78 = vst [vmem:[%s187_s3] sm:$0xff] %v76_v21 }
  0xa2   :  { %79 = vst [vmem:[%s187_s3 + $0x8] sm:$0xff] %v77_v22 }

// kernel: mha_forward.4
= control target key start
LH: loop header
LB: loop body
LE: loop exit
PB: predicated region body
PF: predicated region fallthrough
CT: control target
= control target key end

     0   :  { %s402_s12 = smov 0   ;;  %s431_s0 = inlined_call_operand.vmem [shape: f32[8,8,128], index: 0, kind: input, shape index: {}]   ;;  %s432_s1 = inlined_call_operand.vmem [shape: f32[8,8,128], index: 1, kind: input, shape index: {}]   ;;  %s433_s2 = inlined_call_operand.vmem [shape: f32[8,8,128], index: 2, kind: input, shape index: {}]   ;;  %s434_s3 = inlined_call_operand.vmem [shape: f32[8,8,128], index: 3, kind: output, shape index: {}]  }
   0x1 LB: > { %s350_s13 = sadd.s32 4294967295, %s380_s12   ;;  %p354_p0 = scmp.ge.s32.totalorder %s380_s12, 1  ;;  %s380_s12 = sphi %s402_s12, %s13_s12  }
   0x2   : > { %p154_p1 = scmp.lt.s32.totalorder %s380_s12, 9 }
   0x4   : > { %p155_p2 = pnand %p354_p0, %p154_p1 }
   0x5   : > { %p184_p3 = scmp.lt.s32.totalorder (!%p155_p2), %s350_s13, 7 }
   0x6   : > { %158 = sbr.rel (%p155_p2) target bundleno = 411 (0x19b), region = 32 }
   0xb   : > { %s436_s13 = smov (!%p184_p3, %s350_s13), 7  ;;  %vm224_vm0 = vcmask 64512  }
   0xc   : > { %s410_s14 = sshll.u32 %s436_s13, 3 }
   0xd   : > { %s191_s17 = scalar_lea.vmem %s432_s1, %s410_s14  ;;  %s187_s20 = scalar_lea.vmem %s431_s0, %s410_s14 }
   0xe   : > { %v201_v0 = vld [vmem:[%s191_s17] sm:$0xff]  ;;  %s195_s23 = scalar_lea.vmem %s433_s2, %s410_s14  ;;  %s199_s26 = scalar_lea.vmem %s434_s3, %s410_s14 }
   0xf   : > { %218 = vmatpush.xpose.msra.mxu0 %v201_v0  ;;  %v200_v1 = vld [vmem:[%s187_s20] sm:$0xff] }
  0x10   : > { %v202_v5 = vld [vmem:[%s195_s23] sm:$0xff] }
  0x11   : > { %252 = vmatpush.msra.mxu1 %v202_v5 }
  0x12   : > { %219 = vmatmul.f32.vlgmr.msra.gmra.mxu0 %v200_v1 }
  0x8f   : > { %v220_v2 = vpop.f32.mrf.mxu0 }
  0x90   : > { %v223_v3 = vmul.f32 0.35355338, %v220_v2 }
  0x92   : > { %v225_v4 = vsel %vm224_vm0, %v223_v3, -inf }
  0x93   : > { %226 = vmax.xlane.f32.xlu0 %v225_v4 }
 0x106   : > { %v227_v6 = vpop.xlane.xlu0 %226 }
 0x107   : > { %v228_v7 = vsub.f32 %v223_v3, %v227_v6 }
 0x109   : > { %v229_v8 = vmul.f32 1.442695, %v228_v7 }
 0x10b   : > { %370 = vpow2.f32 %v229_v8 }
 0x111   : > { %v371_v9 = vpop.eup %370 }
 0x112   : > { %359 = vmatmul.msk.f32.vlgmr.msra.gmra.mxu1 %vm224_vm0, %v371_v9  ;;  %v231_v10 = vsel %vm224_vm0, %v371_v9, 0.0 }
 0x113   : > { %232 = vadd.xlane.f32.xlu0 %v231_v10 }
 0x186   : > { %v233_v11 = vpop.xlane.xlu0 %232 }
 0x187   : > { %372 = vrcp.f32 %v233_v11  ;;  %v268_v15 = vand.u32 2147483648, %v233_v11  ;;  %v266_v17 = vand.u32 2147483647, %v233_v11  ;;  %vm262_vm2 = vweird.f32 %v233_v11 }
 0x189   : > { %v269_v19 = vor.u32 1.1754944e-38, %v268_v15  ;;  %vm267_vm4 = vcmp.eq.f32.partialorder %v266_v17, 8.507059e+37 }
 0x18d   : > { %v373_v12 = vpop.eup %372 }
 0x18e   : > { %v258_v13 = vmul.f32 %v373_v12, %v233_v11  ;;  %vm263_vm1 = vweird.f32 %v373_v12 }
 0x18f   : > { %vm264_vm3 = vmor %vm262_vm2, %vm263_vm1  ;;  %v254_v21 = vpop.f32.mrf.mxu1 }
 0x190   : > { %v259_v14 = vsub.f32 1.0, %v258_v13 }
 0x192   : > { %v260_v16 = vmul.f32 %v373_v12, %v259_v14 }
 0x194   : > { %v261_v18 = vadd.f32 %v373_v12, %v260_v16 }
 0x196   : > { %v265_v20 = vsel %vm264_vm3, %v373_v12, %v261_v18 }
 0x197   : > { %v270_v22 = vsel %vm267_vm4, %v269_v19, %v265_v20 }
 0x198   : > { %v271_v23 = vmul.f32 %v270_v22, %v254_v21 }
 0x19a   : > { %272 = vst [vmem:[%s199_s26] sm:$0xff] %v271_v23 }
 0x19b PF: > { %s13_s12 = sadd.s32 1, %s380_s12  }
 0x19c   : > { %p10_p4 = scmp.ge.s32.totalorder %s13_s12, 10  }
 0x19e   :  { %12 = sbr.rel (!%p10_p4) target bundleno = 1 (0x1), region = 68 }

</bundles_post_ra>
